<compile_context>
chip_gen: v5e
topology: v5e:2x2
jax: 0.10.0
libtpu: 0.0.40
codegen_flags: <defaults>
</compile_context>

<pallas_src>
import functools
from typing import NamedTuple

import jax
import jax.numpy as jnp
from jax.experimental import pallas as pl
from jax.experimental.pallas import tpu as pltpu

LEAKY_SLOPE = 0.01  # PyTorch nn.LeakyReLU default negative_slope


def _leaky_relu(x):
    # slope < 1  =>  max(x, slope*x) == LeakyReLU(x); saves a compare+select.
    return jnp.maximum(x, LEAKY_SLOPE * x)


def _round_up(x, m):
    return (x + m - 1) // m * m


def generator_kernel(x_ref, w_in_ref, b_in_ref, w_h_ref, b_h_ref,
                     w_out_ref, b_out_ref, out_ref, *, block_num,
                     epilogue_dtype):
    """Fused MLP forward: Linear+LeakyReLU, block_num x shared Linear+LeakyReLU,
    final Linear.  MXU operands in mxu dtype, f32 accumulation, epilogue in
    `epilogue_dtype` (bf16 on v6e/v7x, f32 on v5e)."""
    # Hoist the shared hidden-block weight/bias reads above the unrolled loop.
    w_h = w_h_ref[...]
    b_h = b_h_ref[...].astype(epilogue_dtype)

    # Input layer: z_dim -> hidden.
    h = jnp.dot(x_ref[...], w_in_ref[...], preferred_element_type=jnp.float32)
    h = _leaky_relu(h.astype(epilogue_dtype)
                    + b_in_ref[...].astype(epilogue_dtype))

    # block_num hidden blocks sharing one Linear (see module note above).
    # TODO(synk): switch to lax.fori_loop(..., unroll=True) if block_num > ~8.
    for _ in range(block_num):
        h = jnp.dot(h.astype(w_h.dtype), w_h,
                    preferred_element_type=jnp.float32)
        h = _leaky_relu(h.astype(epilogue_dtype) + b_h)

    # Output projection: hidden -> output_dim (no activation), f32 out.
    out = jnp.dot(h.astype(w_out_ref.dtype), w_out_ref[...],
                  preferred_element_type=jnp.float32)
    out_ref[...] = (out + b_out_ref[...]).astype(out_ref.dtype)


class PreparedParams(NamedTuple):
    """Padded + MXU-dtype parameters.  Built ONCE via prepare_params()."""
    w_in: jax.Array    # [Kp, Hp]  mxu dtype
    b_in: jax.Array    # [1, Hp]   f32
    w_h: jax.Array     # [Hp, Hp]  mxu dtype (shared across block_num blocks)
    b_h: jax.Array     # [1, Hp]   f32
    w_out: jax.Array   # [Hp, Np]  mxu dtype
    b_out: jax.Array   # [1, Np]   f32
    z_dim: int
    out_dim: int


def prepare_params(params, *, mxu_dtype=jnp.bfloat16):
    """Zero-pad feature axes (hidden/output to 128 lanes, z_dim to 8 sublanes)
    and cast weights to the MXU dtype.  Call once and reuse the result so the
    per-call path carries no pad/convert passes over the parameters.
    Zero padding is exact: padded weight rows/cols and bias entries stay 0
    through LeakyReLU, and padded outputs are sliced off."""
    w_in, b_in, w_h, b_h, w_out, b_out = params
    z_dim, hidden = w_in.shape
    out_dim = w_out.shape[1]
    Kp = _round_up(z_dim, 8)       # sublane granularity only; MXU takes short K
    Hp = _round_up(hidden, 128)    # lane-dense hidden
    Np = _round_up(out_dim, 128)   # lane-dense (unmasked) output stores

    def pad2(a, rows, cols):
        return jnp.pad(a, ((0, rows - a.shape[0]), (0, cols - a.shape[1])))

    return PreparedParams(
        w_in=pad2(w_in, Kp, Hp).astype(mxu_dtype),
        b_in=pad2(b_in, 1, Hp).astype(jnp.float32),
        w_h=pad2(w_h, Hp, Hp).astype(mxu_dtype),
        b_h=pad2(b_h, 1, Hp).astype(jnp.float32),
        w_out=pad2(w_out, Hp, Np).astype(mxu_dtype),
        b_out=pad2(b_out, 1, Np).astype(jnp.float32),
        z_dim=z_dim, out_dim=out_dim)


def _default_epilogue_dtype():
    """bf16 VPU exists on v6e/v7x; older chips (<= v5e) lack it -> keep f32."""
    try:
        kind = jax.devices()[0].device_kind.lower()
    except Exception:
        return jnp.float32
    for old in ("v2", "v3", "v4", "v5"):
        if old in kind:
            return jnp.float32
    return jnp.bfloat16


def generator_forward(z, prepared: PreparedParams, *, block_num=4,
                      batch_tile=512, epilogue_dtype=None,
                      single_buffer_params=False):
    """z: [B, z_dim] f32; prepared: output of prepare_params()."""
    if epilogue_dtype is None:
        epilogue_dtype = _default_epilogue_dtype()

    B, z_dim = z.shape
    assert z_dim == prepared.z_dim, "z feature dim mismatch"
    Kp, Hp = prepared.w_in.shape
    Np = prepared.w_out.shape[1]
    mxu_dtype = prepared.w_in.dtype

    # Batch tiling: multiple of 8 sublanes; keep >= 2 grid steps when B >= 16
    # so the "parallel" batch axis can be split across v7x's two TensorCores.
    Bp = _round_up(B, 8)
    tile = min(batch_tile, Bp)
    if Bp >= 16:
        tile = min(tile, max(8, (Bp // 2) // 8 * 8))
    Bp = _round_up(Bp, tile)
    grid = (Bp // tile,)

    # Per-call activation prep: cast to MXU dtype; pad only if actually needed.
    x = z.astype(mxu_dtype)
    if Bp != B or Kp != z_dim:
        x = jnp.pad(x, ((0, Bp - B), (0, Kp - z_dim)))

    param_arrays = (prepared.w_in, prepared.b_in, prepared.w_h, prepared.b_h,
                    prepared.w_out, prepared.b_out)

    # Parameters use constant index maps (same block every grid step, fetched
    # once).  pl.Buffered(1) removes their double-buffer allocation but is an
    # explicit opt-in (requires pl.Buffered support in this jax build); the
    # default path never silently changes buffering or re-executes.
    # TODO(synk): for very large hidden (Hp*Hp weight near the VMEM budget,
    # especially v7x's 64 MiB), add a K-tiled "arbitrary" grid axis or stream
    # w_h via pltpu.emit_pipeline instead of keeping it fully resident.
    if single_buffer_params:
        def pspec(shape):
            return pl.BlockSpec(shape, lambda i: (0, 0),
                                pipeline_mode=pl.Buffered(1))
    else:
        def pspec(shape):
            return pl.BlockSpec(shape, lambda i: (0, 0))

    in_specs = [pl.BlockSpec((tile, Kp), lambda i: (i, 0))]
    in_specs += [pspec(p.shape) for p in param_arrays]
    out_spec = pl.BlockSpec((tile, Np), lambda i: (i, 0))

    flops = 2 * Bp * (Kp * Hp + block_num * Hp * Hp + Hp * Np)
    param_bytes = sum(p.size * p.dtype.itemsize for p in param_arrays)
    x_bytes = x.size * x.dtype.itemsize
    out_bytes = Bp * Np * 4
    cost = pl.CostEstimate(flops=flops, transcendentals=0,
                           bytes_accessed=x_bytes + param_bytes + out_bytes)

    # Explicit VMEM budget: double-buffered x/out tiles, (possibly double-
    # buffered) resident params, slack for f32 intermediates.  Raises v5e's
    # 16 MiB scoped default; clamped to v7x's 64 MiB physical VMEM.
    itemsize = jnp.dtype(mxu_dtype).itemsize
    needed = (2 * tile * Kp * itemsize + 2 * tile * Np * 4
              + 2 * param_bytes + 4 * tile * Hp * 4 + (8 << 20))
    vmem_limit = int(min(max(needed, 32 << 20), 64 << 20))

    out_p = pl.pallas_call(
        functools.partial(generator_kernel, block_num=block_num,
                          epilogue_dtype=epilogue_dtype),
        out_shape=jax.ShapeDtypeStruct((Bp, Np), jnp.float32),
        grid_spec=pltpu.PrefetchScalarGridSpec(
            num_scalar_prefetch=0,
            grid=grid,
            in_specs=in_specs,
            out_specs=out_spec,
        ),
        compiler_params=pltpu.CompilerParams(
            dimension_semantics=("parallel",),
            vmem_limit_bytes=vmem_limit),
        cost_estimate=cost,
    )(x, *param_arrays)

    # Slice away batch/output padding (lane-dense store happened in-kernel).
    return out_p[:B, :prepared.out_dim]


def init_params(key, z_dim, hidden_dim, output_dim):
    """PyTorch nn.Linear default init U(-1/sqrt(fan_in), 1/sqrt(fan_in)).
    Weights stored [in, out]; the hidden layer is a single shared (w, b)."""
    def linear(k, fan_in, fan_out):
        kw, kb = jax.random.split(k)
        bound = 1.0 / (fan_in ** 0.5)
        w = jax.random.uniform(kw, (fan_in, fan_out), jnp.float32, -bound, bound)
        b = jax.random.uniform(kb, (1, fan_out), jnp.float32, -bound, bound)
        return w, b

    k1, k2, k3 = jax.random.split(key, 3)
    w_in, b_in = linear(k1, z_dim, hidden_dim)
    w_h, b_h = linear(k2, hidden_dim, hidden_dim)      # shared across blocks
    w_out, b_out = linear(k3, hidden_dim, output_dim)
    return (w_in, b_in, w_h, b_h, w_out, b_out)


def generator_reference(z, params, *, block_num=4):
    """Pure-JAX f32 reference of the same forward pass (for verification)."""
    w_in, b_in, w_h, b_h, w_out, b_out = params

    def lrelu(x):
        return jnp.where(x > 0, x, LEAKY_SLOPE * x)

    h = lrelu(z.astype(jnp.float32) @ w_in + b_in)
    for _ in range(block_num):
        h = lrelu(h @ w_h + b_h)
    return h @ w_out + b_out


if __name__ == "__main__":
    key = jax.random.PRNGKey(0)
    k_z, k_p = jax.random.split(key)

    batch = 16
    z_dim = 8
    hidden_dim = 32
    output_dim = 2
    block_num = 4

    z = jax.random.normal(k_z, (batch, z_dim), jnp.float32)
    raw_params = init_params(k_p, z_dim, hidden_dim, output_dim)

    # One-time parameter prep (pad + MXU-dtype cast); reuse across calls.
    prepared = prepare_params(raw_params)

    out = generator_forward(z, prepared, block_num=block_num)
    out = jax.block_until_ready(out)

    ref = generator_reference(z, raw_params, block_num=block_num)
    assert out.shape == (batch, output_dim)
    # bf16 MXU operands (and bf16 epilogue on v6e/v7x) vs f32 reference.
    assert jnp.allclose(out, ref, atol=3e-2, rtol=3e-2), "mismatch vs reference"

    print("KERNEL_OK")
</pallas_src>

<mosaic_0001>
module attributes {stable_mosaic.version = 11 : i64} {
  func.func @generator_kernel(%arg0: i32, %arg1: memref<8x8xbf16, #tpu.memory_space<vmem>>, %arg2: memref<8x128xbf16, #tpu.memory_space<vmem>>, %arg3: memref<1x128xf32, #tpu.memory_space<vmem>>, %arg4: memref<128x128xbf16, #tpu.memory_space<vmem>>, %arg5: memref<1x128xf32, #tpu.memory_space<vmem>>, %arg6: memref<128x128xbf16, #tpu.memory_space<vmem>>, %arg7: memref<1x128xf32, #tpu.memory_space<vmem>>, %arg8: memref<8x128xf32, #tpu.memory_space<vmem>>) attributes {dimension_semantics = [#tpu.dimension_semantics<parallel>], iteration_bounds = array<i64: 2>, scalar_prefetch = 0 : i64, scratch_operands = 0 : i64, tpu.core_type = #tpu.core_type<tc>, window_params = [{transform_indices = @transform_0, window_bounds = array<i64: 8, 8>}, {pipeline_mode = #tpu.pipeline_mode<synchronous>, transform_indices = @transform_1, window_bounds = array<i64: 8, 128>}, {pipeline_mode = #tpu.pipeline_mode<synchronous>, transform_indices = @transform_2, window_bounds = array<i64: 1, 128>}, {pipeline_mode = #tpu.pipeline_mode<synchronous>, transform_indices = @transform_3, window_bounds = array<i64: 128, 128>}, {pipeline_mode = #tpu.pipeline_mode<synchronous>, transform_indices = @transform_4, window_bounds = array<i64: 1, 128>}, {pipeline_mode = #tpu.pipeline_mode<synchronous>, transform_indices = @transform_5, window_bounds = array<i64: 128, 128>}, {pipeline_mode = #tpu.pipeline_mode<synchronous>, transform_indices = @transform_6, window_bounds = array<i64: 1, 128>}, {transform_indices = @transform_7, window_bounds = array<i64: 8, 128>}]} {
    %c0 = arith.constant 0 : index
    %c0_0 = arith.constant 0 : index
    %0 = vector.load %arg4[%c0, %c0_0] : memref<128x128xbf16, #tpu.memory_space<vmem>>, vector<128x128xbf16>
    %c0_1 = arith.constant 0 : index
    %c0_2 = arith.constant 0 : index
    %1 = vector.load %arg5[%c0_1, %c0_2] : memref<1x128xf32, #tpu.memory_space<vmem>>, vector<1x128xf32>
    %2 = arith.truncf %1 : vector<1x128xf32> to vector<1x128xbf16>
    %c0_3 = arith.constant 0 : index
    %c0_4 = arith.constant 0 : index
    %3 = vector.load %arg1[%c0_3, %c0_4] : memref<8x8xbf16, #tpu.memory_space<vmem>>, vector<8x8xbf16>
    %c0_5 = arith.constant 0 : index
    %c0_6 = arith.constant 0 : index
    %4 = vector.load %arg2[%c0_5, %c0_6] : memref<8x128xbf16, #tpu.memory_space<vmem>>, vector<8x128xbf16>
    %cst = arith.constant dense<0.000000e+00> : vector<8x128xf32>
    %5 = tpu.matmul %3, %4, %cst {dimension_numbers = #tpu.dot_dimension_numbers<[1], [0], [0], [1], [0, 0, 1, 1], [], []>} : vector<8x8xbf16>, vector<8x128xbf16>, vector<8x128xf32> -> vector<8x128xf32>
    %6 = arith.truncf %5 : vector<8x128xf32> to vector<8x128xbf16>
    %c0_7 = arith.constant 0 : index
    %c0_8 = arith.constant 0 : index
    %7 = vector.load %arg3[%c0_7, %c0_8] : memref<1x128xf32, #tpu.memory_space<vmem>>, vector<1x128xf32>
    %8 = arith.truncf %7 : vector<1x128xf32> to vector<1x128xbf16>
    %9 = vector.broadcast %8 : vector<1x128xbf16> to vector<8x128xbf16>
    %10 = arith.addf %6, %9 : vector<8x128xbf16>
    %cst_9 = arith.constant 1.000980e-02 : bf16
    %11 = vector.broadcast %cst_9 : bf16 to vector<8x128xbf16>
    %12 = arith.mulf %11, %10 : vector<8x128xbf16>
    %13 = arith.maximumf %10, %12 : vector<8x128xbf16>
    %cst_10 = arith.constant dense<0.000000e+00> : vector<8x128xf32>
    %14 = tpu.matmul %13, %0, %cst_10 {dimension_numbers = #tpu.dot_dimension_numbers<[1], [0], [0], [1], [0, 0, 1, 1], [], []>} : vector<8x128xbf16>, vector<128x128xbf16>, vector<8x128xf32> -> vector<8x128xf32>
    %15 = arith.truncf %14 : vector<8x128xf32> to vector<8x128xbf16>
    %16 = vector.broadcast %2 : vector<1x128xbf16> to vector<8x128xbf16>
    %17 = arith.addf %15, %16 : vector<8x128xbf16>
    %cst_11 = arith.constant 1.000980e-02 : bf16
    %18 = vector.broadcast %cst_11 : bf16 to vector<8x128xbf16>
    %19 = arith.mulf %18, %17 : vector<8x128xbf16>
    %20 = arith.maximumf %17, %19 : vector<8x128xbf16>
    %cst_12 = arith.constant dense<0.000000e+00> : vector<8x128xf32>
    %21 = tpu.matmul %20, %0, %cst_12 {dimension_numbers = #tpu.dot_dimension_numbers<[1], [0], [0], [1], [0, 0, 1, 1], [], []>} : vector<8x128xbf16>, vector<128x128xbf16>, vector<8x128xf32> -> vector<8x128xf32>
    %22 = arith.truncf %21 : vector<8x128xf32> to vector<8x128xbf16>
    %23 = vector.broadcast %2 : vector<1x128xbf16> to vector<8x128xbf16>
    %24 = arith.addf %22, %23 : vector<8x128xbf16>
    %cst_13 = arith.constant 1.000980e-02 : bf16
    %25 = vector.broadcast %cst_13 : bf16 to vector<8x128xbf16>
    %26 = arith.mulf %25, %24 : vector<8x128xbf16>
    %27 = arith.maximumf %24, %26 : vector<8x128xbf16>
    %cst_14 = arith.constant dense<0.000000e+00> : vector<8x128xf32>
    %28 = tpu.matmul %27, %0, %cst_14 {dimension_numbers = #tpu.dot_dimension_numbers<[1], [0], [0], [1], [0, 0, 1, 1], [], []>} : vector<8x128xbf16>, vector<128x128xbf16>, vector<8x128xf32> -> vector<8x128xf32>
    %29 = arith.truncf %28 : vector<8x128xf32> to vector<8x128xbf16>
    %30 = vector.broadcast %2 : vector<1x128xbf16> to vector<8x128xbf16>
    %31 = arith.addf %29, %30 : vector<8x128xbf16>
    %cst_15 = arith.constant 1.000980e-02 : bf16
    %32 = vector.broadcast %cst_15 : bf16 to vector<8x128xbf16>
    %33 = arith.mulf %32, %31 : vector<8x128xbf16>
    %34 = arith.maximumf %31, %33 : vector<8x128xbf16>
    %cst_16 = arith.constant dense<0.000000e+00> : vector<8x128xf32>
    %35 = tpu.matmul %34, %0, %cst_16 {dimension_numbers = #tpu.dot_dimension_numbers<[1], [0], [0], [1], [0, 0, 1, 1], [], []>} : vector<8x128xbf16>, vector<128x128xbf16>, vector<8x128xf32> -> vector<8x128xf32>
    %36 = arith.truncf %35 : vector<8x128xf32> to vector<8x128xbf16>
    %37 = vector.broadcast %2 : vector<1x128xbf16> to vector<8x128xbf16>
    %38 = arith.addf %36, %37 : vector<8x128xbf16>
    %cst_17 = arith.constant 1.000980e-02 : bf16
    %39 = vector.broadcast %cst_17 : bf16 to vector<8x128xbf16>
    %40 = arith.mulf %39, %38 : vector<8x128xbf16>
    %41 = arith.maximumf %38, %40 : vector<8x128xbf16>
    %c0_18 = arith.constant 0 : index
    %c0_19 = arith.constant 0 : index
    %42 = vector.load %arg6[%c0_18, %c0_19] : memref<128x128xbf16, #tpu.memory_space<vmem>>, vector<128x128xbf16>
    %cst_20 = arith.constant dense<0.000000e+00> : vector<8x128xf32>
    %43 = tpu.matmul %41, %42, %cst_20 {dimension_numbers = #tpu.dot_dimension_numbers<[1], [0], [0], [1], [0, 0, 1, 1], [], []>} : vector<8x128xbf16>, vector<128x128xbf16>, vector<8x128xf32> -> vector<8x128xf32>
    %c0_21 = arith.constant 0 : index
    %c0_22 = arith.constant 0 : index
    %44 = vector.load %arg7[%c0_21, %c0_22] : memref<1x128xf32, #tpu.memory_space<vmem>>, vector<1x128xf32>
    %45 = vector.broadcast %44 : vector<1x128xf32> to vector<8x128xf32>
    %46 = arith.addf %43, %45 : vector<8x128xf32>
    %c0_23 = arith.constant 0 : index
    %c0_24 = arith.constant 0 : index
    %47 = vector.load %arg8[%c0_23, %c0_24] : memref<8x128xf32, #tpu.memory_space<vmem>>, vector<8x128xf32>
    tpu.vector_store %arg8[%c0_23, %c0_24], %46 {strides = array<i32>} : memref<8x128xf32, #tpu.memory_space<vmem>>, vector<8x128xf32>,
    return
  }
  func.func @transform_0(%arg0: i32) -> (i32, i32) {
    %c0_i32 = arith.constant 0 : i32
    %c0_i32_0 = arith.constant 0 : i32
    return %arg0, %c0_i32 : i32, i32
  }
  func.func @transform_1(%arg0: i32) -> (i32, i32) {
    %c0_i32 = arith.constant 0 : i32
    %c0_i32_0 = arith.constant 0 : i32
    %c0_i32_1 = arith.constant 0 : i32
    return %c0_i32, %c0_i32_0 : i32, i32
  }
  func.func @transform_2(%arg0: i32) -> (i32, i32) {
    %c0_i32 = arith.constant 0 : i32
    %c0_i32_0 = arith.constant 0 : i32
    %c0_i32_1 = arith.constant 0 : i32
    return %c0_i32, %c0_i32_0 : i32, i32
  }
  func.func @transform_3(%arg0: i32) -> (i32, i32) {
    %c0_i32 = arith.constant 0 : i32
    %c0_i32_0 = arith.constant 0 : i32
    %c0_i32_1 = arith.constant 0 : i32
    return %c0_i32, %c0_i32_0 : i32, i32
  }
  func.func @transform_4(%arg0: i32) -> (i32, i32) {
    %c0_i32 = arith.constant 0 : i32
    %c0_i32_0 = arith.constant 0 : i32
    %c0_i32_1 = arith.constant 0 : i32
    return %c0_i32, %c0_i32_0 : i32, i32
  }
  func.func @transform_5(%arg0: i32) -> (i32, i32) {
    %c0_i32 = arith.constant 0 : i32
    %c0_i32_0 = arith.constant 0 : i32
    %c0_i32_1 = arith.constant 0 : i32
    return %c0_i32, %c0_i32_0 : i32, i32
  }
  func.func @transform_6(%arg0: i32) -> (i32, i32) {
    %c0_i32 = arith.constant 0 : i32
    %c0_i32_0 = arith.constant 0 : i32
    %c0_i32_1 = arith.constant 0 : i32
    return %c0_i32, %c0_i32_0 : i32, i32
  }
  func.func @transform_7(%arg0: i32) -> (i32, i32) {
    %c0_i32 = arith.constant 0 : i32
    %c0_i32_0 = arith.constant 0 : i32
    return %arg0, %c0_i32 : i32, i32
  }
}

</mosaic_0001>

<bundles_post_ra>
// kernel: tpu_custom_call.1
= control target key start
LH: loop header
LB: loop body
LE: loop exit
PB: predicated region body
PF: predicated region fallthrough
CT: control target
= control target key end

     0   :  { %12 = vsyncpa [#allocation3], 0  ;;  %s1147_s0 = inlined_call_operand.vmem [shape: bf16[16,8], index: 0, kind: input, shape index: {}]   ;;  %s1148_s1 = inlined_call_operand.vmem [shape: bf16[8,128], index: 1, kind: input, shape index: {}]   ;;  %s1149_s2 = inlined_call_operand.vmem [shape: f32[1,128], index: 2, kind: input, shape index: {}]   ;;  %s1150_s3 = inlined_call_operand.hbm [shape: bf16[128,128], index: 3, kind: input, shape index: {}]   ;;  %s1151_s4 = inlined_call_operand.vmem [shape: f32[1,128], index: 4, kind: input, shape index: {}]   ;;  %s1152_s5 = inlined_call_operand.hbm [shape: bf16[128,128], index: 5, kind: input, shape index: {}]   ;;  %s1153_s6 = inlined_call_operand.vmem [shape: f32[1,128], index: 6, kind: input, shape index: {}]   ;;  %s1154_s7 = inlined_call_operand.hbm [shape: f32[16,128], index: 7, kind: output, shape index: {}]  }
   0x1   :  { %13 = vsyncpa [#allocation6], 0 }
   0x2   :  { %14 = vsyncpa [#allocation4], 0 }
   0x3   :  { %16 = vsyncpa [#allocation4 + $0x1], 0  ;;  %s1025_s24 = smov 0   ;;  %s1027_s25 = smov 0  }
   0x4   :  { %s1029_s26 = smov 0   ;;  %s1031_s27 = smov 0  }
   0x5 LB: > { %s1046_s28 = sadd.s32 4294967295, %s979_s27   ;;  %s691_s29 = sadd.s32 4294967294, %s979_s27   ;;  %s979_s27 = sphi %s1031_s27, %s1161_s27   ;;  %s975_s26 = sphi %s1029_s26, %s1160_s26   ;;  %s971_s25 = sphi %s1027_s25, %s1159_s25   ;;  %s967_s24 = sphi %s1025_s24, %s1158_s24  }
   0x6   : > { %s1050_s30 = sadd.s32 1, %s979_s27   ;;  %s181_s8 = sadd.s32 1, %s975_s26 }
   0x7   : > { %s178_s9 = ssub.s32 %s979_s27, %s1050_s30  ;;  %p191_p0 = scmp.ne.s32.totalorder %s975_s26, %s971_s25 }
   0x8   : > { %p179_p1 = scmp.eq.s32.totalorder %s178_s9, 0  ;;  %p192_p2 = scmp.eq.s32.totalorder %s1046_s28, 1 }
   0x9   : > { %p197_p3 = scmp.ne.s32.totalorder %s971_s25, %s967_s24  ;;  %p198_p4 = scmp.eq.s32.totalorder %s691_s29, 1 }
   0xa   : > { %s1061_s10 = scalar_select %p179_p1, %s975_s26, %s181_s8  }
   0xb   : > { %p1063_p5 = por %p192_p2, %p191_p0  ;;  %p1067_p6 = por %p198_p4, %p197_p3 }
   0xc   : > { %p692_p7 = scmp.ge.s32.totalorder %s979_s27, 1  ;;  %p205_p8 = scmp.lt.s32.totalorder %s979_s27, 3 }
   0xd   : > { %p807_p9 = scmp.eq.s32.totalorder %s1046_s28, 0  ;;  %s222_s16 = sshll.u32 %s1150_s3, 4  ;;  %s223_s16 = int_to_ptr.hbm [resolvable:$true] %s222_s16 }
   0xe   : > { %p1074_p10 = pnand %p692_p7, %p205_p8  ;;  %s981_s17 = smov [#allocation2]  }
   0xf   : > { %s224_s18 = sshll.u32 %s981_s17, 4  ;;  %s239_s21 = sshll.u32 %s1152_s5, 4  ;;  %s225_s18 = int_to_ptr.vmem [resolvable:$true] %s224_s18  ;;  %s240_s21 = int_to_ptr.hbm [resolvable:$true] %s239_s21 }
  0x10   : > { %p796_p11 = pneg %p1074_p10  ;;  %s982_s22 = smov 64  }
  0x11   : > { %s983_s23 = smov 4   ;;  %s984_s29 = smov [#allocation5]  }
  0x12   : > { %p797_p12 = pnand %p807_p9, %p796_p11  ;;  %s241_s8 = sshll.u32 %s984_s29, 4  ;;  %s242_s8 = int_to_ptr.vmem [resolvable:$true] %s241_s8 }
  0x13   : > { %267 = sbr.rel (%p1074_p10) target bundleno = 890 (0x37a), region = 48 }
  0x14   : > { %799 = dma.hbm_to_vmem [thread:$0]  (!%p797_p12), %s223_s16, 1024, %s225_s18, [#allocation3], %s982_s22, %s982_s22, %s983_s23  }
  0x15   : > { %802 = dma.hbm_to_vmem [thread:$0]  (!%p797_p12), %s240_s21, 1024, %s242_s8, [#allocation6], %s982_s22, %s982_s22, %s983_s23  }
  0x18   : > { %954 = dma.done.wait (%p807_p9), [#allocation3], 1024  }
  0x19   : > { %956 = vsyncadd (%p807_p9), [#allocation3], 4294966272 }
  0x1a   : > { %958 = dma.done.wait (%p807_p9), [#allocation6], 1024  }
  0x1b   : > { %960 = vsyncadd (%p807_p9), [#allocation6], 4294966272  ;;  %p304_p13 = scmp.lt.s32.totalorder %s1046_s28, 1  ;;  %vm333_vm0 = vcmask 1043456   ;;  %v328_v0 = vld [vmem:[%s1148_s1] sm:$0xf] }
  0x1c   : > { %v777_v1 = vld [vmem:[#allocation2 + $0x38] sm:$0xff]  ;;  %v335_v2 = vsel %vm333_vm0, %v328_v0, 0  ;;  %vm329_vm1 = vcmask 64512   ;;  %v776_v4 = vld [vmem:[#allocation2 + $0x30] sm:$0xff]  ;;  %v775_v5 = vld [vmem:[#allocation2 + $0x28] sm:$0xff]  ;;  %s301_s23 = sand.u32 1, %s971_s25  }
  0x1d   : > { %s305_s9 = scalar_select %p304_p13, %s1046_s28, 1  ;;  %344 = vmatpush.bf16.msra.mxu0 %v335_v2  ;;  %415 = vmatpush.bf16.msra.mxu1 %v777_v1  ;;  %v774_v6 = vld [vmem:[#allocation2 + $0x20] sm:$0xff]  ;;  %v773_v7 = vld [vmem:[#allocation2 + $0x18] sm:$0xff]  ;;  %v772_v8 = vld [vmem:[#allocation2 + $0x10] sm:$0xff] }
  0x1e   : > { %443 = vmatpush.bf16.msra.mxu2 %v777_v1  ;;  %466 = vmatpush.bf16.msra.mxu3 %v777_v1  ;;  %v771_v9 = vld [vmem:[#allocation2 + $0x8] sm:$0xff]  ;;  %v770_v10 = vld [vmem:[#allocation2] sm:$0xff]  ;;  %v785_v51 = vld [vmem:[#allocation5 + $0x38] sm:$0xff]  ;;  %s767_s29 = sshll.u32 %s1046_s28, 3  ;;  %s699_s8 = sshll.u32 %s301_s23, 3 }
  0x1f   : > { %s700_s14 = sshll.u32 %s305_s9, 2  ;;  %v351_v11 = vld [vmem:[%s1149_s2] sm:$0x1]  ;;  %v784_v52 = vld [vmem:[#allocation5 + $0x30] sm:$0xff]  ;;  %v783_v53 = vld [vmem:[#allocation5 + $0x28] sm:$0xff]  ;;  %s605_s13 = scalar_lea.hbm %s1154_s7, %s767_s29 }
  0x20   : > { %s307_s16 = scalar_lea.vmem %s1147_s0, %s700_s14  ;;  %v352_v12 = vpack.c.bf16 %v351_v11, %v351_v11  ;;  %v325_v26 = vld [vmem:[%s1151_s4] sm:$0x1]  ;;  %v780_v2 = vld [vmem:[#allocation5 + $0x10] sm:$0xff]  ;;  %s303_s17 = scalar_lea.vmem [#allocation7], %s699_s8 }
  0x21   : > { %v327_v3 = vld [vmem:[%s307_s16] sm:$0xf]  ;;  %489 = vmatpush.bf16.msrb.mxu0 %v777_v1  ;;  %416 = vmatpush.bf16.msra.mxu1 %v776_v4  ;;  %v326_v27 = vpack.c.bf16 %v325_v26, %v325_v26  ;;  %v781_v1 = vld [vmem:[#allocation5 + $0x18] sm:$0xff]  ;;  %s607_s18 = sshll.u32 %s303_s17, 4  ;;  %s609_s19 = sshll.u32 %s605_s13, 4  ;;  %s608_s18 = int_to_ptr.vmem [resolvable:$true] %s607_s18  ;;  %s610_s19 = int_to_ptr.hbm [resolvable:$true] %s609_s19 }
  0x22   : > { %701 = vmatmul.msk.bf16.vlgmr.msra.gmra.mxu0 %vm329_vm1, %v327_v3  ;;  %444 = vmatpush.bf16.msra.mxu2 %v776_v4  ;;  %v354_v13 = vpack.i.b16 %v352_v12, %v352_v12  ;;  %v782_v54 = vld [vmem:[#allocation5 + $0x20] sm:$0xff]  ;;  %v779_v3 = vld [vmem:[#allocation5 + $0x8] sm:$0xff]  ;;  %s595_s20 = scalar_lea.sflag [#allocation4], %s301_s23  ;;  %s923_s28 = sshra.s32 %s610_s19, 4  ;;  %s924_s28 = int_to_ptr.hbm [resolvable:$true] %s923_s28 }
  0x23   : > { %467 = vmatpush.bf16.msra.mxu3 %v776_v4  ;;  %v430_v28 = vpack.i.b16 %v326_v27, %v326_v27  ;;  %s925_s21 = scalar_lea.hbm %s924_s28, 8  ;;  %s929_s9 = scalar_lea.hbm %s1154_s7, 16 }
  0x24   : > { %v356_v14 = vperm.slane %v354_v13, 0  ;;  %p926_p0 = scmp.ne.s32.totalorder %s924_s28, %s925_s21  ;;  %p930_p3 = scmp.lt.s32.totalorder %s924_s28, %s1154_s7 }
  0x25   : > { %490 = vmatpush.bf16.msrb.mxu0 %v776_v4  ;;  %417 = vmatpush.bf16.msra.mxu1 %v775_v5  ;;  %v432_v29 = vperm.slane %v430_v28, 0  ;;  %v778_v4 = vld [vmem:[#allocation5] sm:$0xff]  ;;  %p931_p4 = scmp.lt.s32.totalorder %s929_s9, %s925_s21 }
  0x26   : > { %445 = vmatpush.bf16.msra.mxu2 %v775_v5  ;;  %v358_v17 = vunpack.c.l.bf16 %v356_v14  ;;  %p927_p1 = pnand %p926_p0, %p1063_p5 }
  0x27   : > { %468 = vmatpush.bf16.msra.mxu3 %v775_v5  ;;  %v434_v32 = vunpack.c.l.bf16 %v432_v29  ;;  %p932_p7 = por %p931_p4, %p930_p3 }
  0x28   : > { %p928_p2 = pneg %p927_p1 }
  0x29   : > { %491 = vmatpush.bf16.msrb.mxu0 %v775_v5  ;;  %418 = vmatpush.bf16.msra.mxu1 %v774_v6 }
  0x2a   : > { %446 = vmatpush.bf16.msra.mxu2 %v774_v6  ;;  %p933_p8 = pnand %p932_p7, %p928_p2 }
  0x2b   : > { %469 = vmatpush.bf16.msra.mxu3 %v774_v6 }
  0x2d   : > { %492 = vmatpush.bf16.msrb.mxu0 %v774_v6  ;;  %419 = vmatpush.bf16.msra.mxu1 %v773_v7 }
  0x2e   : > { %447 = vmatpush.bf16.msra.mxu2 %v773_v7 }
  0x2f   : > { %470 = vmatpush.bf16.msra.mxu3 %v773_v7 }
  0x31   : > { %493 = vmatpush.bf16.msrb.mxu0 %v773_v7  ;;  %420 = vmatpush.bf16.msra.mxu1 %v772_v8 }
  0x32   : > { %448 = vmatpush.bf16.msra.mxu2 %v772_v8 }
  0x33   : > { %471 = vmatpush.bf16.msra.mxu3 %v772_v8 }
  0x35   : > { %494 = vmatpush.bf16.msrb.mxu0 %v772_v8  ;;  %421 = vmatpush.bf16.msra.mxu1 %v771_v9 }
  0x36   : > { %449 = vmatpush.bf16.msra.mxu2 %v771_v9 }
  0x37   : > { %472 = vmatpush.bf16.msra.mxu3 %v771_v9 }
  0x39   : > { %495 = vmatpush.bf16.msrb.mxu0 %v771_v9  ;;  %422 = vmatpush.bf16.msra.mxu1 %v770_v10 }
  0x3a   : > { %450 = vmatpush.bf16.msra.mxu2 %v770_v10 }
  0x3b   : > { %473 = vmatpush.bf16.msra.mxu3 %v770_v10 }
  0x3d   : > { %496 = vmatpush.bf16.msrb.mxu0 %v770_v10  ;;  %580 = vmatpush.bf16.msrb.mxu1 %v785_v51 }
  0x41   : > { %581 = vmatpush.bf16.msrb.mxu1 %v784_v52 }
  0x45   : > { %582 = vmatpush.bf16.msrb.mxu1 %v783_v53 }
  0x49   : > { %583 = vmatpush.bf16.msrb.mxu1 %v782_v54 }
  0x4d   : > { %584 = vmatpush.bf16.msrb.mxu1 %v781_v1 }
  0x51   : > { %585 = vmatpush.bf16.msrb.mxu1 %v780_v2 }
  0x55   : > { %586 = vmatpush.bf16.msrb.mxu1 %v779_v3 }
  0x59   : > { %587 = vmatpush.bf16.msrb.mxu1 %v778_v4 }
  0x9f   : > { %v346_v15 = vpop.f32.mrf.mxu0 }
  0xa0   : > { %v350_v16 = vpack.c.bf16 %v346_v15, %v346_v15  ;;  %v848_v15 = vld [vmem:[%s1153_s6] ss:$0 sm:$0xff] }
  0xa2   : > { %v357_v18 = vunpack.c.l.bf16 %v350_v16 }
  0xa4   : > { %v359_v19 = vadd.f32 %v358_v17, %v357_v18 }
  0xa6   : > { %v360_v20 = vpack.c.bf16 %v359_v19, %v359_v19 }
  0xa7   : > { %v348_v21 = vpop.f32.mrf.mxu0 }
  0xa8   : > { %v361_v22 = vunpack.c.l.bf16 %v360_v20 }
  0xaa   : > { %v362_v23 = vmul.f32 0.010009766, %v361_v22 }
  0xac   : > { %v365_v24 = vmax.f32 %v361_v22, %v362_v23 }
  0xae   : > { %v366_v25 = vpack.c.bf16 %v365_v24, %v365_v24 }
  0xb0   : > { %423 = vmatmul.bf16.vlgmr.msra.gmra.mxu1 %v366_v25 }
 0x12d   : > { %v424_v30 = vpop.f32.mrf.mxu1 }
 0x12e   : > { %v428_v31 = vpack.c.bf16 %v424_v30, %v424_v30 }
 0x130   : > { %v433_v33 = vunpack.c.l.bf16 %v428_v31 }
 0x132   : > { %v435_v34 = vadd.f32 %v434_v32, %v433_v33 }
 0x134   : > { %v436_v35 = vpack.c.bf16 %v435_v34, %v435_v34 }
 0x135   : > { %v426_v36 = vpop.f32.mrf.mxu1 }
 0x136   : > { %v437_v37 = vunpack.c.l.bf16 %v436_v35 }
 0x138   : > { %v438_v38 = vmul.f32 0.010009766, %v437_v37 }
 0x13a   : > { %v441_v39 = vmax.f32 %v437_v37, %v438_v38 }
 0x13c   : > { %v442_v40 = vpack.c.bf16 %v441_v39, %v441_v39 }
 0x13e   : > { %451 = vmatmul.bf16.vlgmr.msra.gmra.mxu2 %v442_v40 }
 0x1c1   : > { %v452_v41 = vpop.f32.mrf.mxu2 }
 0x1c2   : > { %v456_v42 = vpack.c.bf16 %v452_v41, %v452_v41 }
 0x1c4   : > { %v457_v43 = vunpack.c.l.bf16 %v456_v42 }
 0x1c6   : > { %v458_v44 = vadd.f32 %v457_v43, %v434_v32 }
 0x1c8   : > { %v459_v45 = vpack.c.bf16 %v458_v44, %v458_v44 }
 0x1c9   : > { %v454_v46 = vpop.f32.mrf.mxu2 }
 0x1ca   : > { %v460_v47 = vunpack.c.l.bf16 %v459_v45 }
 0x1cc   : > { %v461_v48 = vmul.f32 0.010009766, %v460_v47 }
 0x1ce   : > { %v464_v49 = vmax.f32 %v460_v47, %v461_v48 }
 0x1d0   : > { %v465_v50 = vpack.c.bf16 %v464_v49, %v464_v49 }
 0x1d2   : > { %474 = vmatmul.bf16.vlgmr.msra.gmra.mxu3 %v465_v50 }
 0x255   : > { %v475_v55 = vpop.f32.mrf.mxu3 }
 0x256   : > { %v479_v56 = vpack.c.bf16 %v475_v55, %v475_v55 }
 0x258   : > { %v480_v57 = vunpack.c.l.bf16 %v479_v56 }
 0x25a   : > { %v481_v58 = vadd.f32 %v480_v57, %v434_v32 }
 0x25c   : > { %v482_v59 = vpack.c.bf16 %v481_v58, %v481_v58 }
 0x25d   : > { %v477_v60 = vpop.f32.mrf.mxu3 }
 0x25e   : > { %v483_v61 = vunpack.c.l.bf16 %v482_v59 }
 0x260   : > { %v484_v62 = vmul.f32 0.010009766, %v483_v61 }
 0x262   : > { %v487_v63 = vmax.f32 %v483_v61, %v484_v62 }
 0x264   : > { %v488_v0 = vpack.c.bf16 %v487_v63, %v487_v63 }
 0x266   : > { %497 = vmatmul.bf16.vlgmr.msrb.gmra.mxu0 %v488_v0 }
 0x2e3   : > { %v498_v5 = vpop.f32.mrf.mxu0 }
 0x2e4   : > { %v502_v6 = vpack.c.bf16 %v498_v5, %v498_v5 }
 0x2e6   : > { %v503_v7 = vunpack.c.l.bf16 %v502_v6 }
 0x2e8   : > { %v504_v8 = vadd.f32 %v503_v7, %v434_v32 }
 0x2ea   : > { %v505_v9 = vpack.c.bf16 %v504_v8, %v504_v8 }
 0x2eb   : > { %v500_v10 = vpop.f32.mrf.mxu0 }
 0x2ec   : > { %v506_v11 = vunpack.c.l.bf16 %v505_v9 }
 0x2ee   : > { %v507_v12 = vmul.f32 0.010009766, %v506_v11 }
 0x2f0   : > { %v510_v13 = vmax.f32 %v506_v11, %v507_v12 }
 0x2f2   : > { %v511_v14 = vpack.c.bf16 %v510_v13, %v510_v13 }
 0x2f4   : > { %588 = vmatmul.bf16.vlgmr.msrb.gmra.mxu1 %v511_v14 }
 0x371   : > { %v589_v16 = vpop.f32.mrf.mxu1 }
 0x372   : > { %v590_v17 = vadd.f32 %v848_v15, %v589_v16 }
 0x374   : > { %593 = vst [vmem:[%s303_s17] sm:$0xff] %v590_v17 }
 0x375   : > { %936 = shalt.err (!%p933_p8)
}
 0x376   : > { %794 = dma.vmem_to_hbm [thread:$0]  (%p1063_p5), %s608_s18, 128, %s610_s19, %s595_s20  }
 0x379   : > { %v591_v18 = vpop.f32.mrf.mxu1 }
 0x37a PF: > { %p811_p9 = scmp.ge.s32.totalorder %s979_s27, 2  ;;  %s621_s23 = sand.u32 1, %s967_s24  }
 0x37b   : > { %s622_s13 = scalar_lea.sflag [#allocation4], %s621_s23 }
 0x37c   : > { %p804_p10 = pnand %p811_p9, %p1067_p6 }
 0x37e   : > { %p805_p11 = pneg %p804_p10 }
 0x380   : > { %962 = dma.done.wait (%p805_p11), %s622_s13, 128  }
 0x381   : > { %964 = vsyncadd (%p805_p11), %s622_s13, 4294967168  ;;  %p19_p12 = scmp.ge.s32.totalorder %s1050_s30, 4   ;;  %s1158_s24 = smov %s971_s25 }
 0x382   : > { %s1159_s25 = smov %s975_s26  ;;  %s1160_s26 = smov %s1061_s10 }
 0x383   : > { %s1161_s27 = smov %s1050_s30  ;;  %21 = sbr.rel (!%p19_p12) target bundleno = 5 (0x5), region = 92 }
 0x388   :  { %628 = vsyncpa [#allocation3], 1 }
 0x389   :  { %630 = vsyncpa [#allocation3 + $0x1], 1 }
 0x38a   :  { %631 = vsyncpa [#allocation6], 1 }
 0x38b   :  { %632 = vsyncpa [#allocation4], 1 }
 0x38c   :  { %634 = vsyncpa [#allocation4 + $0x1], 1 }

</bundles_post_ra>
